<compile_context>
chip_gen: v5e
topology: v5e:2x2
jax: 0.10.0
libtpu: 0.0.40
codegen_flags: <defaults>
</compile_context>

<pallas_src>
import functools

import jax
import jax.numpy as jnp
from jax import lax
from jax.experimental import pallas as pl
from jax.experimental.pallas import tpu as pltpu


def _round_up(x, m):
    return (x + m - 1) // m * m


def _vmem_capacity_bytes():
    """Physical VMEM per TensorCore; conservative fallback if the query is unavailable."""
    try:
        info = pltpu.get_tpu_info()
        return int(getattr(info, "vmem_capacity_bytes", 64 * 1024 * 1024))
    except Exception:
        return 64 * 1024 * 1024  # assume the smallest (v7x-class) VMEM


def _focal_partial_kernel(x_ref, t_ref, out_ref, *, n_total, tn):
    """One row-tile: per-row cross-entropy, masked sum -> lane-dense partial output."""
    i = pl.program_id(0)

    x = x_ref[...].astype(jnp.float32)          # (TN, C), cast from native dtype
    t = t_ref[...]                              # (TN, 1) int32

    # Numerically-stable log-sum-exp over the class (lane) axis.
    m = jnp.max(x, axis=-1, keepdims=True)                                  # (TN, 1)
    lse = m + jnp.log(jnp.sum(jnp.exp(x - m), axis=-1, keepdims=True))      # (TN, 1)

    # Gather logits[r, targets[r]] via a one-hot mask (VPU-friendly, no dynamic gather).
    col = lax.broadcasted_iota(jnp.int32, x.shape, 1)                       # (TN, C)
    picked = jnp.sum(jnp.where(col == t, x, 0.0), axis=-1, keepdims=True)   # (TN, 1)

    # Mask rows that are past the end of the array (ragged last tile: OOB reads are
    # unspecified garbage; the select discards them, NaN/inf included).
    row = lax.broadcasted_iota(jnp.int32, (tn, 1), 0) + i * tn              # (TN, 1)
    ce_per_row = jnp.where(row < n_total, lse - picked, 0.0)                # (TN, 1)

    partial = jnp.sum(ce_per_row)                                           # scalar
    # Lane-dense, unmasked store of the per-tile partial sum.
    out_ref[...] = jnp.full(out_ref.shape, partial, dtype=jnp.float32)


def focal_loss(inputs, targets, *, alpha=1.0, gamma=2.0, reduce=True,
               max_rows_per_tile=None):
    """inputs: (N, C) float logits (any float dtype); targets: (N,) int class indices.

    Returns a scalar focal loss matching the PyTorch FocalLoss module.
    """
    N, C = inputs.shape
    dtype = inputs.dtype
    itemsize = jnp.dtype(dtype).itemsize
    sublane = max(8, 32 // itemsize)        # 8 for f32, 16 for bf16/f16, 32 for int8/fp8

    # Generation-aware budgets: v7x has 64 MiB VMEM (but 3.2 TB/s HBM); v5e/v6e have 128 MiB.
    vmem_cap = _vmem_capacity_bytes()
    if vmem_cap <= 64 * 1024 * 1024:
        combined_tile_budget = 6 * 1024 * 1024     # logits + targets, per pipeline buffer
        vmem_limit = 40 * 1024 * 1024
    else:
        combined_tile_budget = 10 * 1024 * 1024
        vmem_limit = 64 * 1024 * 1024

    # Per-row VMEM cost: logits row (lane-padded to 128 in VMEM) + targets row, which
    # expands from (tn, 1) to (tn, 128) lanes (512 B/row) — folded into the budget so
    # it never squeezes the logits tile.
    bytes_per_row = _round_up(C, 128) * itemsize + 128 * 4
    tn = combined_tile_budget // bytes_per_row
    tn = max(sublane, min(8192, tn) // sublane * sublane)
    if max_rows_per_tile is not None:
        tn = min(tn, max(sublane, _round_up(int(max_rows_per_tile), sublane)))
    tn = min(tn, _round_up(N, sublane))

    num_tiles = (N + tn - 1) // tn
    t2 = targets.astype(jnp.int32).reshape(N, 1)

    kernel = functools.partial(_focal_partial_kernel, n_total=N, tn=tn)

    cost = pl.CostEstimate(
        flops=7 * N * C,
        transcendentals=N * C,
        bytes_accessed=N * C * itemsize + N * 4 + num_tiles * 8 * 128 * 4,
    )

    partials = pl.pallas_call(
        kernel,
        out_shape=jax.ShapeDtypeStruct((num_tiles, 8, 128), jnp.float32),
        grid_spec=pltpu.PrefetchScalarGridSpec(
            num_scalar_prefetch=0,
            grid=(num_tiles,),
            in_specs=[
                # Full (unpadded) class dim: legal because it equals the array dim.
                pl.BlockSpec((tn, C), lambda i: (i, 0)),   # logits, native dtype over HBM
                pl.BlockSpec((tn, 1), lambda i: (i, 0)),   # targets
            ],
            out_specs=pl.BlockSpec((1, 8, 128), lambda i: (i, 0, 0)),
        ),
        compiler_params=pltpu.CompilerParams(
            dimension_semantics=("parallel",),       # independent tiles -> megacore on v7x
            vmem_limit_bytes=vmem_limit,
        ),
        cost_estimate=cost,
    )(inputs, t2)

    # Final tiny reduction + focal transform in the wrapper (scalar work).
    ce = jnp.sum(partials[:, 0, 0]) / jnp.float32(N)
    pt = jnp.exp(-ce)
    one_minus_pt = 1.0 - pt
    g = float(gamma)
    if g == int(g) and 0 <= int(g) <= 8:
        mod = jnp.float32(1.0)
        for _ in range(int(g)):
            mod = mod * one_minus_pt        # multiply chain; avoids log+exp pow
    else:
        mod = one_minus_pt ** jnp.float32(g)
    loss = jnp.float32(alpha) * mod * ce

    # reduce=True -> torch.mean of a scalar is the scalar itself; reduce=False returns
    # the same scalar (the module's F_loss is already scalar).
    return loss


def _reference(inputs, targets, alpha=1.0, gamma=2.0):
    logp = jax.nn.log_softmax(inputs.astype(jnp.float32), axis=-1)
    ce = -jnp.mean(logp[jnp.arange(inputs.shape[0]), targets])
    pt = jnp.exp(-ce)
    return alpha * (1.0 - pt) ** gamma * ce


if __name__ == "__main__":
    key = jax.random.PRNGKey(0)
    k1, k2, k3, k4 = jax.random.split(key, 4)

    # Small case consistent with the module: batch=8 logits over 32 classes.
    N, C = 8, 32
    inputs = jax.random.normal(k1, (N, C), dtype=jnp.float32)
    targets = jax.random.randint(k2, (N,), 0, C, dtype=jnp.int32)

    loss = focal_loss(inputs, targets, alpha=1.0, gamma=2.0, reduce=True)
    loss = jax.block_until_ready(loss)
    ref = _reference(inputs, targets, alpha=1.0, gamma=2.0)
    assert jnp.allclose(loss, ref, rtol=1e-5, atol=1e-5), (loss, ref)

    # Exercise the streaming path: multi-tile grid, ragged last block with row masking,
    # bf16 logits over HBM, non-128-multiple class dim.
    N2, C2 = 40, 48
    inputs2 = jax.random.normal(k3, (N2, C2), dtype=jnp.bfloat16)
    targets2 = jax.random.randint(k4, (N2,), 0, C2, dtype=jnp.int32)
    loss2 = focal_loss(inputs2, targets2, alpha=0.5, gamma=2.0, max_rows_per_tile=16)
    loss2 = jax.block_until_ready(loss2)
    ref2 = _reference(inputs2, targets2, alpha=0.5, gamma=2.0)
    assert jnp.allclose(loss2, ref2, rtol=1e-4, atol=1e-4), (loss2, ref2)

    print("KERNEL_OK")
</pallas_src>

<mosaic_0001>
module attributes {stable_mosaic.version = 11 : i64} {
  func.func @_focal_partial_kernel(%arg0: i32, %arg1: memref<8x32xf32, #tpu.memory_space<vmem>>, %arg2: memref<8x1xi32, #tpu.memory_space<vmem>>, %arg3: memref<1x8x128xf32, #tpu.memory_space<vmem>>) attributes {dimension_semantics = [#tpu.dimension_semantics<parallel>], iteration_bounds = array<i64: 1>, scalar_prefetch = 0 : i64, scratch_operands = 0 : i64, tpu.core_type = #tpu.core_type<tc>, window_params = [{transform_indices = @transform_0, window_bounds = array<i64: 8, 32>}, {transform_indices = @transform_1, window_bounds = array<i64: 8, 1>}, {transform_indices = @transform_2, window_bounds = array<i64: 1, 8, 128>}]} {
    %c0 = arith.constant 0 : index
    %c0_0 = arith.constant 0 : index
    %0 = vector.load %arg1[%c0, %c0_0] : memref<8x32xf32, #tpu.memory_space<vmem>>, vector<8x32xf32>
    %c0_1 = arith.constant 0 : index
    %c0_2 = arith.constant 0 : index
    %1 = vector.load %arg2[%c0_1, %c0_2] : memref<8x1xi32, #tpu.memory_space<vmem>>, vector<8x1xi32>
    %cst = arith.constant dense<0xFF800000> : vector<8xf32>
    %2 = vector.multi_reduction <maximumf>, %0, %cst [1] : vector<8x32xf32> to vector<8xf32>
    %3 = vector.shape_cast %2 : vector<8xf32> to vector<8x1xf32>
    %4 = vector.broadcast %3 : vector<8x1xf32> to vector<8x32xf32>
    %5 = arith.subf %0, %4 : vector<8x32xf32>
    %6 = math.exp %5 : vector<8x32xf32>
    %cst_3 = arith.constant dense<0.000000e+00> : vector<8xf32>
    %7 = vector.multi_reduction <add>, %6, %cst_3 [1] : vector<8x32xf32> to vector<8xf32>
    %8 = vector.shape_cast %7 : vector<8xf32> to vector<8x1xf32>
    %9 = math.log %8 : vector<8x1xf32>
    %10 = arith.addf %3, %9 : vector<8x1xf32>
    %11 = tpu.iota {dimensions = array<i32: 1>} : vector<8x32xi32>
    %12 = vector.broadcast %1 : vector<8x1xi32> to vector<8x32xi32>
    %13 = arith.cmpi eq, %11, %12 : vector<8x32xi32>
    %cst_4 = arith.constant 0.000000e+00 : f32
    %14 = vector.broadcast %cst_4 : f32 to vector<8x32xf32>
    %15 = arith.select %13, %0, %14 : vector<8x32xi1>, vector<8x32xf32>
    %cst_5 = arith.constant dense<0.000000e+00> : vector<8xf32>
    %16 = vector.multi_reduction <add>, %15, %cst_5 [1] : vector<8x32xf32> to vector<8xf32>
    %17 = vector.shape_cast %16 : vector<8xf32> to vector<8x1xf32>
    %18 = tpu.iota {dimensions = array<i32: 0>} : vector<8x1xi32>
    %c8_i32 = arith.constant 8 : i32
    %19 = arith.muli %arg0, %c8_i32 : i32
    %20 = vector.broadcast %19 : i32 to vector<8x1xi32>
    %21 = arith.addi %18, %20 : vector<8x1xi32>
    %c8_i32_6 = arith.constant 8 : i32
    %22 = vector.broadcast %c8_i32_6 : i32 to vector<8x1xi32>
    %23 = arith.cmpi slt, %21, %22 : vector<8x1xi32>
    %24 = arith.subf %10, %17 : vector<8x1xf32>
    %cst_7 = arith.constant 0.000000e+00 : f32
    %25 = vector.broadcast %cst_7 : f32 to vector<8x1xf32>
    %26 = arith.select %23, %24, %25 : vector<8x1xi1>, vector<8x1xf32>
    %27 = vector.shape_cast %26 : vector<8x1xf32> to vector<1x8x1xf32>
    %cst_8 = arith.constant dense<0.000000e+00> : vector<1xf32>
    %28 = vector.multi_reduction <add>, %27, %cst_8 [1, 2] : vector<1x8x1xf32> to vector<1xf32>
    %29 = vector.shape_cast %28 : vector<1xf32> to vector<1x1x1xf32>
    %30 = vector.extract %29[0, 0, 0] : f32 from vector<1x1x1xf32>
    %31 = vector.broadcast %30 : f32 to vector<1x8x128xf32>
    %c0_9 = arith.constant 0 : index
    %c0_10 = arith.constant 0 : index
    %c0_11 = arith.constant 0 : index
    %32 = vector.load %arg3[%c0_9, %c0_10, %c0_11] : memref<1x8x128xf32, #tpu.memory_space<vmem>>, vector<1x8x128xf32>
    tpu.vector_store %arg3[%c0_9, %c0_10, %c0_11], %31 {strides = array<i32>} : memref<1x8x128xf32, #tpu.memory_space<vmem>>, vector<1x8x128xf32>,
    return
  }
  func.func @transform_0(%arg0: i32) -> (i32, i32) {
    %c0_i32 = arith.constant 0 : i32
    %c0_i32_0 = arith.constant 0 : i32
    return %arg0, %c0_i32 : i32, i32
  }
  func.func @transform_1(%arg0: i32) -> (i32, i32) {
    %c0_i32 = arith.constant 0 : i32
    %c0_i32_0 = arith.constant 0 : i32
    return %arg0, %c0_i32 : i32, i32
  }
  func.func @transform_2(%arg0: i32) -> (i32, i32, i32) {
    %c0_i32 = arith.constant 0 : i32
    %c0_i32_0 = arith.constant 0 : i32
    %c0_i32_1 = arith.constant 0 : i32
    return %arg0, %c0_i32, %c0_i32_0 : i32, i32, i32
  }
}

</mosaic_0001>

<bundles_post_ra>
// kernel: tpu_custom_call.1
= control target key start
LH: loop header
LB: loop body
LE: loop exit
PB: predicated region body
PF: predicated region fallthrough
CT: control target
= control target key end

     0   :  { %vm14_vm0 = vcmask 261120   ;;  %s138_s0 = inlined_call_operand.vmem [shape: f32[8,32], index: 0, kind: input, shape index: {}]   ;;  %s139_s1 = inlined_call_operand.vmem [shape: s32[8,1], index: 1, kind: input, shape index: {}]   ;;  %s140_s2 = inlined_call_operand.hbm [shape: f32[1,8,128], index: 2, kind: output, shape index: {}]  }
   0x1   :  { %v12_v0 = vld [vmem:[%s138_s0] sm:$0xff] }
   0x2   :  { %7 = vsyncpa [#allocation3], 0  ;;  %v15_v1 = vsel %vm14_vm0, %v12_v0, -inf  ;;  %v109_v2 = vmov 0   ;;  %v13_v3 = vld [vmem:[%s139_s1] sm:$0xff]  ;;  %v27_v9 = vlaneseq  ;;  %vm45_vm2 = vcmask 7168  }
   0x3   :  { %78 = vset.pattern.permute.xlu0 %v109_v2  ;;  %s110_s0 = smov [#allocation2]   ;;  %s65_s15 = sshll.u32 %s140_s2, 4  ;;  %s66_s15 = int_to_ptr.hbm [resolvable:$true] %s65_s15 }
   0x4   :  { %16 = vmax.xlane.f32.xlu0 %v15_v1  ;;  %v28_v10 = vand.u32 127, %v27_v9  ;;  %s63_s1 = sshll.u32 %s110_s0, 4  ;;  %s64_s1 = int_to_ptr.vmem [resolvable:$true] %s63_s1 }
  0x18   :  { %30 = vperm.xlu0 %78, %v13_v3  }
  0x77   :  { %v17_v4 = vpop.xlane.xlu0 %16 }
  0x78   :  { %v18_v5 = vsub.f32 %v12_v0, %v17_v4 }
  0x7a   :  { %v19_v6 = vmul.f32 1.442695, %v18_v5 }
  0x7c   :  { %79 = vpow2.f32 %v19_v6 }
  0x82   :  { %v80_v7 = vpop.eup %79 }
  0x83   :  { %v21_v8 = vsel %vm14_vm0, %v80_v7, 0.0 }
  0x84   :  { %22 = vadd.xlane.f32.xlu1 %v21_v8 }
  0x8a   :  { %v31_v11 = vpop.permute.xlu0 %30 }
  0x8b   :  { %vm32_vm1 = vcmp.eq.s32.totalorder %v28_v10, %v31_v11 }
  0x8c   :  { %v33_v12 = vsel %vm32_vm1, %v12_v0, 0.0 }
  0x8d   :  { %v34_v13 = vsel %vm14_vm0, %v33_v12, 0.0 }
  0x8e   :  { %35 = vadd.xlane.f32.xlu1 %v34_v13 }
  0xf7   :  { %v23_v14 = vpop.xlane.xlu1 %22 }
  0xf8   :  { %81 = vlog2.f32 %v23_v14 }
  0xfe   :  { %v82_v15 = vpop.eup %81 }
  0xff   :  { %v25_v16 = vmul.f32 0.6931472, %v82_v15 }
 0x101   :  { %v26_v17 = vadd.f32 %v25_v16, %v17_v4  ;;  %v36_v18 = vpop.xlane.xlu1 %35 }
 0x103   :  { %v43_v19 = vsub.f32 %v26_v17, %v36_v18 }
 0x105   :  { %v46_v20 = vsel %vm45_vm2, %v43_v19, 0.0 }
 0x106   :  { %47 = vadd.xlane.f32.xlu2 %v46_v20 }
 0x179   :  { %v48_v21 = vpop.xlane.xlu2 %47 }
 0x17a   :  { %v49_v22 = vrot.slane %v48_v21, 4 }
 0x17c   :  { %v50_v23 = vadd.f32 %v49_v22, %v48_v21 }
 0x17e   :  { %v51_v24 = vrot.slane %v50_v23, 2 }
 0x180   :  { %v52_v25 = vadd.f32 %v51_v24, %v50_v23 }
 0x182   :  { %v53_v26 = vrot.slane %v52_v25, 1 }
 0x184   :  { %v54_v27 = vadd.f32 %v53_v26, %v52_v25 }
 0x186   :  { %74 = vpush %v54_v27 }
 0x1b7   :  { %s75_s16 = spop %74 }
 0x1b8   :  { %v56_v28 = vstv %s75_s16 }
 0x1b9   :  { %57 = vst [vmem:[#allocation2] sm:$0xff] %v56_v28 }
 0x1ba   :  { %68 = dma.vmem_to_hbm [thread:$0]  %s64_s1, 128, %s66_s15, [#allocation3]  }
 0x1bb   :  { %107 = dma.done.wait [#allocation3], 128  }
 0x1bc   :  { %108 = vsyncadd [#allocation3], 4294967168 }
 0x1bd   :  { %73 = vsyncpa [#allocation3], 1 }

</bundles_post_ra>
